<compile_context>
chip_gen: v7x
topology: tpu7x:2x2x1
jax: 0.10.0
libtpu: 0.0.40
codegen_flags: <defaults>
</compile_context>

<pallas_src>
import math

import jax
import jax.numpy as jnp
from jax.experimental import pallas as pl
from jax.experimental.pallas import tpu as pltpu


# --------------------------------------------------------------------------
# Kernel 1: fused time-embedding (one-hot gather -> Linear -> Swish -> Linear)
# --------------------------------------------------------------------------
def _temb_kernel(t_ref, table_ref, w1_ref, b1_ref, w2_ref, b2_ref, out_ref):
    # t_ref: (B_pad, 1) int32; table: (T, d_model); w1: (d_model, tdim);
    # w2: (tdim, tdim); b1/b2: (1, tdim); out: (B_pad, tdim) f32.
    B_pad = out_ref.shape[0]
    T = table_ref.shape[0]
    # Vectorized one-hot (single VALU compare) -> MXU gather of the table.
    col = jax.lax.broadcasted_iota(jnp.int32, (B_pad, T), 1)
    onehot = (col == t_ref[...]).astype(jnp.float32)
    emb = jnp.dot(onehot, table_ref[...], preferred_element_type=jnp.float32)
    h = jnp.dot(emb, w1_ref[...], preferred_element_type=jnp.float32) + b1_ref[...]
    h = h * jax.nn.sigmoid(h)                                    # Swish
    out_ref[...] = (
        jnp.dot(h, w2_ref[...], preferred_element_type=jnp.float32) + b2_ref[...]
    )


def time_embedding_forward(t, table, w1, b1, w2, b2):
    B = t.shape[0]
    T, d_model = table.shape
    tdim = w1.shape[1]
    B_pad = ((B + 7) // 8) * 8                                   # sublane-dense rows
    t_col = jnp.pad(t.astype(jnp.int32), (0, B_pad - B)).reshape(B_pad, 1)
    out = pl.pallas_call(
        _temb_kernel,
        out_shape=jax.ShapeDtypeStruct((B_pad, tdim), jnp.float32),
    )(t_col, table, w1, b1.reshape(1, tdim), w2, b2.reshape(1, tdim))
    return out[:B]


# --------------------------------------------------------------------------
# Kernel 2: 3x3 conv / pad=1 (image_proj) with in-kernel im2col
# --------------------------------------------------------------------------
def _make_conv3x3_kernel(W_img):
    def kernel(x_ref, w_ref, b_ref, o_ref, patch_ref):
        # x_ref:     (Cin, (tr+2)*W + 2) bf16  halo window (row-flattened,
        #                                       1-lane pad each side)
        # w_ref:     (Cout, 9*Cin)       bf16  tap-major columns (dy, dx, c)
        # b_ref:     (Cout, 1)           f32
        # o_ref:     (Cout, tr*W)        f32   lane-dense NCHW slab
        # patch_ref: (9*Cin, tr*W)       f32   VMEM scratch (im2col tile)
        Cin = x_ref.shape[0]
        tile_len = o_ref.shape[1]

        x = x_ref[...].astype(jnp.float32)          # one bf16 -> f32 unpack
        # A +-1 lane shift of the row-major flattened layout drags in a pixel
        # from the neighbouring image row; zero those columns (w==0 / w==W-1).
        col = jax.lax.broadcasted_iota(jnp.int32, (1, tile_len), 1) % W_img
        m_left = (col != 0).astype(jnp.float32)
        m_right = (col != W_img - 1).astype(jnp.float32)

        for k in range(9):                          # static 3x3 tap loop
            dy, dx = divmod(k, 3)
            s = dy * W_img + dx
            tap = x[:, s:s + tile_len]              # (Cin, tile_len)
            if dx == 0:
                tap = tap * m_left
            elif dx == 2:
                tap = tap * m_right
            patch_ref[k * Cin:(k + 1) * Cin, :] = tap

        o_ref[...] = (
            jnp.dot(w_ref[...].astype(jnp.float32), patch_ref[...],
                    preferred_element_type=jnp.float32)
            + b_ref[...]
        )
    return kernel


def _pick_row_block(B, H, W, Cin, Cout, max_tile_len):
    """Row-block size tr: tr | H, tr*W lane-dense (mult of 128) unless tr==H,
    VMEM-aware, and >= 2 total grid steps when possible (v7x megacore)."""
    # per-column-element VMEM bytes: double-buffered in/out blocks + im2col
    # scratch + one f32 copy of the window; keep per-step VMEM well under the
    # 16 MiB default scoped limit of v5e.
    per_col = 2 * Cin * 2 + 2 * Cout * 4 + 9 * Cin * 4 + Cin * 4
    budget = 12 * 1024 * 1024
    max_len = min(max_tile_len, max(128, budget // per_col))

    divisors = [d for d in range(1, H + 1) if H % d == 0]
    cands = [d for d in divisors if (d * W) % 128 == 0 or d == H]
    ok = [d for d in cands if d * W <= max_len]
    tr = max(ok) if ok else min(cands)
    if B * (H // tr) < 2:                       # let both TensorCores work
        smaller = [d for d in cands if d < tr]
        if smaller:
            tr = max(smaller)
    return tr


def conv2d_3x3(x_nchw, w_oihw, bias, *, max_tile_len=8192):
    """PyTorch-equivalent Conv2d(Cin, Cout, kernel=3, padding=1), NCHW/OIHW."""
    B, Cin, H, W = x_nchw.shape
    Cout = w_oihw.shape[0]
    HW = H * W

    tr = _pick_row_block(B, H, W, Cin, Cout, max_tile_len)
    n_rb = H // tr
    tile_len = tr * W
    win_len = (tr + 2) * W + 2

    # Row-pad once (zeros), cast the streamed activations to bf16, and lay the
    # input out as per-row-block halo windows so plain Blocked BlockSpecs tile
    # it without overlap; ~(tr+2)/tr duplication instead of 9x wrapper im2col.
    xpad = jnp.pad(x_nchw.astype(jnp.bfloat16), ((0, 0), (0, 0), (1, 1), (0, 0)))
    wins = [xpad[:, :, rb * tr: rb * tr + tr + 2, :] for rb in range(n_rb)]
    xb = jnp.stack(wins, axis=1).reshape(B, n_rb, Cin, (tr + 2) * W)
    xb = jnp.pad(xb, ((0, 0), (0, 0), (0, 0), (1, 1)))           # 1-lane halo pad

    # (Cout, Cin, 3, 3) -> (Cout, 9*Cin); tap-major columns (dy, dx, c) match
    # the patch-row order written by the kernel.
    w2d = w_oihw.transpose(0, 2, 3, 1).reshape(Cout, 9 * Cin).astype(jnp.bfloat16)
    b2d = bias.reshape(Cout, 1).astype(jnp.float32)

    out = pl.pallas_call(
        _make_conv3x3_kernel(W),
        out_shape=jax.ShapeDtypeStruct((B, Cout, HW), jnp.float32),
        grid=(B, n_rb),
        in_specs=[
            pl.BlockSpec((None, None, Cin, win_len), lambda b, rb: (b, rb, 0, 0)),
            pl.BlockSpec((Cout, 9 * Cin), lambda b, rb: (0, 0)),   # resident
            pl.BlockSpec((Cout, 1), lambda b, rb: (0, 0)),         # resident
        ],
        out_specs=pl.BlockSpec((None, Cout, tile_len), lambda b, rb: (b, 0, rb)),
        scratch_shapes=[pltpu.VMEM((9 * Cin, tile_len), jnp.float32)],
        compiler_params=pltpu.CompilerParams(
            dimension_semantics=("parallel", "parallel"),
            vmem_limit_bytes=32 * 1024 * 1024,
        ),
    )(xb, w2d, b2d)

    # (B, Cout, H*W) -> (B, Cout, H, W): trailing-dim split, layout-preserving
    # (no transpose / no extra HBM pass).
    return out.reshape(B, Cout, H, W)


# --------------------------------------------------------------------------
# Module-equivalent wrapper
# --------------------------------------------------------------------------
def make_sinusoidal_table(T, d_model):
    # Mirrors the standard DDPM TimeEmbedding table construction.
    assert d_model % 2 == 0
    freqs = jnp.exp(
        -jnp.arange(0, d_model, 2, dtype=jnp.float32) / d_model * math.log(10000.0)
    )
    pos = jnp.arange(T, dtype=jnp.float32)
    ang = pos[:, None] * freqs[None, :]                          # (T, d_model//2)
    emb = jnp.stack([jnp.sin(ang), jnp.cos(ang)], axis=-1)
    return emb.reshape(T, d_model)


class UNetPallas:
    """Pallas port of UNet.__init__/forward (time_embedding + image_proj).

    Notes on the buggy reference: `ch` / `n_channels` are read as `n_ch`,
    so tdim = n_ch * 4 and image_proj = Conv2d(img_ch, n_ch, 3, padding=1).
    """

    def __init__(self, T, img_ch, n_ch, ch_mult, attn, key):
        assert all(i < len(ch_mult) for i in attn), "attn index out of bound"
        tdim = n_ch * 4
        k1, k2, k3, k4 = jax.random.split(key, 4)
        # TimeEmbedding parameters (deterministic synthetic init).
        self.emb_table = make_sinusoidal_table(T, n_ch)          # (T, n_ch)
        self.w1 = jax.random.normal(k1, (n_ch, tdim), jnp.float32) * (1.0 / math.sqrt(n_ch))
        self.b1 = jnp.zeros((tdim,), jnp.float32)
        self.w2 = jax.random.normal(k2, (tdim, tdim), jnp.float32) * (1.0 / math.sqrt(tdim))
        self.b2 = jnp.zeros((tdim,), jnp.float32)
        # image_proj: Conv2d(img_ch, n_ch, 3, padding=1), PyTorch OIHW layout.
        self.conv_w = jax.random.normal(k3, (n_ch, img_ch, 3, 3), jnp.float32) * (
            1.0 / math.sqrt(img_ch * 9)
        )
        self.conv_b = jax.random.normal(k4, (n_ch,), jnp.float32) * 0.01

    def __call__(self, x, t):
        # forward(x, t): temb = self.time_embedding(t)   (fused Pallas kernel)
        temb = time_embedding_forward(
            t, self.emb_table, self.w1, self.b1, self.w2, self.b2
        )
        # image_proj is the other layer defined in __init__; apply it to x.
        h = conv2d_3x3(x, self.conv_w, self.conv_b)              # (B, n_ch, H, W)
        return temb, h


# --------------------------------------------------------------------------
# Pure-JAX reference (for correctness check)
# --------------------------------------------------------------------------
def _ref_forward(model, x, t):
    emb = model.emb_table[t]
    h = emb @ model.w1 + model.b1
    h = h * jax.nn.sigmoid(h)
    temb = h @ model.w2 + model.b2
    out = jax.lax.conv_general_dilated(
        x, model.conv_w, window_strides=(1, 1), padding="SAME",
        dimension_numbers=("NCHW", "OIHW", "NCHW"),
    ) + model.conv_b[None, :, None, None]
    return temb, out


if __name__ == "__main__":
    T, img_ch, n_ch = 100, 4, 32
    ch_mult, attn = [1, 2], [1]
    B, H, W = 2, 16, 16

    key = jax.random.PRNGKey(0)
    kx, kt, kp = jax.random.split(key, 3)
    x = jax.random.normal(kx, (B, img_ch, H, W), jnp.float32)
    t = jax.random.randint(kt, (B,), 0, T, dtype=jnp.int32)

    model = UNetPallas(T, img_ch, n_ch, ch_mult, attn, kp)

    temb, h = model(x, t)
    temb = jax.block_until_ready(temb)
    h = jax.block_until_ready(h)

    temb_ref, h_ref = _ref_forward(model, x, t)
    assert temb.shape == (B, n_ch * 4) and h.shape == (B, n_ch, H, W)
    assert jnp.allclose(temb, temb_ref, rtol=1e-4, atol=1e-4)
    # Conv activations/weights stream as bf16 (f32 accumulation); worst-case
    # rounding of the 36-term dot at these magnitudes is ~2e-2.
    assert jnp.allclose(h, h_ref, rtol=1e-2, atol=3e-2)

    print("KERNEL_OK")
</pallas_src>

<mosaic_0001>
module attributes {stable_mosaic.version = 11 : i64} {
  func.func @_temb_kernel(%arg0: memref<8x1xi32, #tpu.memory_space<vmem>>, %arg1: memref<100x32xf32, #tpu.memory_space<vmem>>, %arg2: memref<32x128xf32, #tpu.memory_space<vmem>>, %arg3: memref<1x128xf32, #tpu.memory_space<vmem>>, %arg4: memref<128x128xf32, #tpu.memory_space<vmem>>, %arg5: memref<1x128xf32, #tpu.memory_space<vmem>>, %arg6: memref<8x128xf32, #tpu.memory_space<vmem>>) attributes {dimension_semantics = [], scalar_prefetch = 0 : i64, scratch_operands = 0 : i64, tpu.core_type = #tpu.core_type<tc>} {
    %0 = tpu.iota {dimensions = array<i32: 1>} : vector<8x100xi32>
    %c0 = arith.constant 0 : index
    %c0_0 = arith.constant 0 : index
    %1 = vector.load %arg0[%c0, %c0_0] : memref<8x1xi32, #tpu.memory_space<vmem>>, vector<8x1xi32>
    %2 = vector.broadcast %1 : vector<8x1xi32> to vector<8x100xi32>
    %3 = arith.cmpi eq, %0, %2 : vector<8x100xi32>
    %4 = arith.extui %3 : vector<8x100xi1> to vector<8x100xi32>
    %5 = arith.sitofp %4 : vector<8x100xi32> to vector<8x100xf32>
    %c0_1 = arith.constant 0 : index
    %c0_2 = arith.constant 0 : index
    %6 = vector.load %arg1[%c0_1, %c0_2] : memref<100x32xf32, #tpu.memory_space<vmem>>, vector<100x32xf32>
    %cst = arith.constant dense<0.000000e+00> : vector<8x32xf32>
    %7 = tpu.matmul %5, %6, %cst {dimension_numbers = #tpu.dot_dimension_numbers<[1], [0], [0], [1], [0, 0, 1, 1], [], []>} : vector<8x100xf32>, vector<100x32xf32>, vector<8x32xf32> -> vector<8x32xf32>
    %c0_3 = arith.constant 0 : index
    %c0_4 = arith.constant 0 : index
    %8 = vector.load %arg2[%c0_3, %c0_4] : memref<32x128xf32, #tpu.memory_space<vmem>>, vector<32x128xf32>
    %cst_5 = arith.constant dense<0.000000e+00> : vector<8x128xf32>
    %9 = tpu.matmul %7, %8, %cst_5 {dimension_numbers = #tpu.dot_dimension_numbers<[1], [0], [0], [1], [0, 0, 1, 1], [], []>} : vector<8x32xf32>, vector<32x128xf32>, vector<8x128xf32> -> vector<8x128xf32>
    %c0_6 = arith.constant 0 : index
    %c0_7 = arith.constant 0 : index
    %10 = vector.load %arg3[%c0_6, %c0_7] : memref<1x128xf32, #tpu.memory_space<vmem>>, vector<1x128xf32>
    %11 = vector.broadcast %10 : vector<1x128xf32> to vector<8x128xf32>
    %12 = arith.addf %9, %11 : vector<8x128xf32>
    %13 = arith.negf %12 : vector<8x128xf32>
    %14 = math.exp %13 : vector<8x128xf32>
    %cst_8 = arith.constant 1.000000e+00 : f32
    %15 = vector.broadcast %cst_8 : f32 to vector<8x128xf32>
    %16 = arith.addf %15, %14 : vector<8x128xf32>
    %17 = arith.divf %15, %16 : vector<8x128xf32>
    %18 = arith.mulf %12, %17 : vector<8x128xf32>
    %c0_9 = arith.constant 0 : index
    %c0_10 = arith.constant 0 : index
    %19 = vector.load %arg4[%c0_9, %c0_10] : memref<128x128xf32, #tpu.memory_space<vmem>>, vector<128x128xf32>
    %cst_11 = arith.constant dense<0.000000e+00> : vector<8x128xf32>
    %20 = tpu.matmul %18, %19, %cst_11 {dimension_numbers = #tpu.dot_dimension_numbers<[1], [0], [0], [1], [0, 0, 1, 1], [], []>} : vector<8x128xf32>, vector<128x128xf32>, vector<8x128xf32> -> vector<8x128xf32>
    %c0_12 = arith.constant 0 : index
    %c0_13 = arith.constant 0 : index
    %21 = vector.load %arg5[%c0_12, %c0_13] : memref<1x128xf32, #tpu.memory_space<vmem>>, vector<1x128xf32>
    %22 = vector.broadcast %21 : vector<1x128xf32> to vector<8x128xf32>
    %23 = arith.addf %20, %22 : vector<8x128xf32>
    %c0_14 = arith.constant 0 : index
    %c0_15 = arith.constant 0 : index
    %24 = vector.load %arg6[%c0_14, %c0_15] : memref<8x128xf32, #tpu.memory_space<vmem>>, vector<8x128xf32>
    tpu.vector_store %arg6[%c0_14, %c0_15], %23 {strides = array<i32>} : memref<8x128xf32, #tpu.memory_space<vmem>>, vector<8x128xf32>,
    return
  }
}

</mosaic_0001>

<bundles_post_ra>
// kernel: tpu_custom_call.1
= control target key start
LH: loop header
LB: loop body
LE: loop exit
PB: predicated region body
PF: predicated region fallthrough
CT: control target
= control target key end

     0   :  { %11 = vsyncpa [#allocation3], 0  ;;  %s751_s0 = inlined_call_operand.vmem [shape: s32[8,1], index: 0, kind: input, shape index: {}]   ;;  %s752_s1 = inlined_call_operand.vmem [shape: f32[100,32], index: 1, kind: input, shape index: {}]   ;;  %s753_s2 = inlined_call_operand.vmem [shape: f32[32,128], index: 2, kind: input, shape index: {}]   ;;  %s754_s3 = inlined_call_operand.hbm [shape: f32[1,128], index: 3, kind: input, shape index: {}]   ;;  %s755_s4 = inlined_call_operand.vmem [shape: f32[128,128], index: 4, kind: input, shape index: {}]   ;;  %s756_s5 = inlined_call_operand.vmem [shape: f32[1,128], index: 5, kind: input, shape index: {}]   ;;  %s757_s6 = inlined_call_operand.hbm [shape: f32[8,128], index: 6, kind: output, shape index: {}]  }
   0x1   :  { %12 = vsyncpa [#allocation4], 0  ;;  %s562_s21 = smov [#allocation2]   ;;  %s514_s25 = scalar_lea.hbm %s754_s3, 16 }
   0x2   :  { %s25_s22 = sshll.u32 %s562_s21, 4  ;;  %p515_p0 = scmp.ne.s32.totalorder %s754_s3, %s514_s25  ;;  %s26_s22 = int_to_ptr.vmem [resolvable:$true] %s25_s22 }
   0x3   :  { %p518_p1 = scmp.lt.u32.totalorder %s514_s25, %s754_s3 }
   0x5   :  { %p520_p2 = pnand %p518_p1, %p515_p0 }
   0x7   :  { %523 = shalt.err (!%p520_p2)
}
   0x8   :  { %s524_s30 = scalar_lea.vmem %s26_s22, 16  ;;  %s528_s7 = scalar_lea.vmem %s26_s22, 32 }
   0x9   :  { %p525_p3 = scmp.ne.s32.totalorder %s26_s22, %s524_s30  ;;  %p529_p4 = scmp.lt.s32.totalorder %s26_s22, %s26_s22 }
   0xa   :  { %p530_p5 = scmp.lt.s32.totalorder %s528_s7, %s524_s30 }
   0xc   :  { %p531_p6 = por %p530_p5, %p529_p4 }
   0xe   :  { %p532_p7 = pnand %p531_p6, %p525_p3 }
  0x10   :  { %535 = shalt.err (!%p532_p7)
}
  0x11   :  { %28 = dma.hbm_to_vmem [thread:$0]  %s754_s3, 16, %s26_s22, [#allocation3]  }
  0x12   :  { %558 = dma.done.wait [#allocation3], 16  }
  0x13   :  { %559 = vsyncadd [#allocation3], 4294967280  ;;  %v563_v0 = vmov 0   ;;  %v564_v1 = vmov 0.0|0.0   ;;  %v38_v2 = vld [vmem:[%s751_s0] sm:$0xff]  ;;  %v46_v4 = vld [vmem:[%s752_s1 + $0x8] sm:$0xff]  ;;  %v36_v23 = vlaneseq }
  0x14   :  { %509 = vset.pattern.permute.xlu0 %v563_v0  ;;  %455 = vmatprep.subr.bf16.mxu0 %v564_v1  ;;  %v45_v3 = vld [vmem:[%s752_s1] sm:$0xff]  ;;  %v47_v6 = vld [vmem:[%s752_s1 + $0x10] sm:$0xff]  ;;  %v48_v7 = vld [vmem:[%s752_s1 + $0x18] sm:$0xff]  ;;  %vm565_vm0 = vmmov 0   ;;  %v566_v8 = vmov 0.0   ;;  %vm62_vm1 = vcmask 1043456  }
  0x15   :  { %479 = vmatprep.subr.bf16.mxu1 %v564_v1  ;;  %40 = vperm.xlu0 %509, %v38_v2   ;;  %v456_v5 = vpack.c.bf16 %v46_v4, %v45_v3  ;;  %v459_v9 = vpack.c.bf16 %v48_v7, %v47_v6  ;;  %v49_v10 = vld [vmem:[%s752_s1 + $0x20] sm:$0xff]  ;;  %v50_v11 = vld [vmem:[%s752_s1 + $0x28] sm:$0xff]  ;;  %v51_v13 = vld [vmem:[%s752_s1 + $0x30] sm:$0xff]  ;;  %v37_v24 = vand.u32 127, %v36_v23  ;;  %vm58_vm2 = vcmask 818176   ;;  %s567_s22 = smov [#allocation5]  }
  0x16   :  { %406 = vmatprep.mubr.msk.f32.mxu0 %vm565_vm0, %v566_v8  ;;  %452 = vmatprep.mubr.msk.f32.mxu1 %vm565_vm0, %v566_v8  ;;  %v462_v12 = vpack.c.bf16 %v50_v11, %v49_v10  ;;  %v52_v14 = vld [vmem:[%s752_s1 + $0x38] sm:$0xff]  ;;  %v53_v16 = vld [vmem:[%s752_s1 + $0x40] sm:$0xff]  ;;  %v54_v17 = vld [vmem:[%s752_s1 + $0x48] sm:$0xff]  ;;  %vm147_vm4 = vcmask 261120  }
  0x17   :  { %457 = vmatpush3.bf16.msra.mxu0 %v456_v5  ;;  %v465_v15 = vpack.c.bf16 %v52_v14, %v51_v13  ;;  %v468_v18 = vpack.c.bf16 %v54_v17, %v53_v16  ;;  %v55_v19 = vld [vmem:[%s752_s1 + $0x50] sm:$0xff]  ;;  %v56_v20 = vld [vmem:[%s752_s1 + $0x58] sm:$0xff]  ;;  %v57_v22 = vld [vmem:[%s752_s1 + $0x60] sm:$0xf] }
  0x18   :  { %458 = vmatprep.subr.bf16.mxu0 %v564_v1  ;;  %v471_v21 = vpack.c.bf16 %v56_v20, %v55_v19  ;;  %v136_v25 = vld [vmem:[%s753_s2] sm:$0xff]  ;;  %v137_v26 = vld [vmem:[%s753_s2 + $0x8] sm:$0xff]  ;;  %v138_v29 = vld [vmem:[%s753_s2 + $0x10] sm:$0xff] }
  0x19   :  { %v474_v28 = vpack.c.bf16 %v137_v26, %v136_v25  ;;  %v139_v30 = vld [vmem:[%s753_s2 + $0x18] sm:$0xff]  ;;  %v228_v35 = vld [vmem:[%s755_s4] sm:$0xff]  ;;  %v229_v36 = vld [vmem:[%s755_s4 + $0x8] sm:$0xff] }
  0x1a   :  { %v477_v32 = vpack.c.bf16 %v139_v30, %v138_v29  ;;  %v480_v37 = vpack.c.bf16 %v229_v36, %v228_v35  ;;  %v230_v38 = vld [vmem:[%s755_s4 + $0x10] sm:$0xff]  ;;  %v231_v39 = vld [vmem:[%s755_s4 + $0x18] sm:$0xff]  ;;  %v232_v41 = vld [vmem:[%s755_s4 + $0x20] sm:$0xff] }
  0x1b   :  { %460 = vmatpush3.bf16.msra.mxu0 %v459_v9  ;;  %v483_v40 = vpack.c.bf16 %v231_v39, %v230_v38  ;;  %v233_v42 = vld [vmem:[%s755_s4 + $0x28] sm:$0xff]  ;;  %v234_v44 = vld [vmem:[%s755_s4 + $0x30] sm:$0xff]  ;;  %v235_v45 = vld [vmem:[%s755_s4 + $0x38] sm:$0xff] }
  0x1c   :  { %461 = vmatprep.subr.bf16.mxu0 %v564_v1  ;;  %481 = vmatpush3.bf16.msra.mxu1 %v480_v37  ;;  %v486_v43 = vpack.c.bf16 %v233_v42, %v232_v41  ;;  %v489_v46 = vpack.c.bf16 %v235_v45, %v234_v44  ;;  %v236_v47 = vld [vmem:[%s755_s4 + $0x40] sm:$0xff]  ;;  %v237_v48 = vld [vmem:[%s755_s4 + $0x48] sm:$0xff]  ;;  %v238_v50 = vld [vmem:[%s755_s4 + $0x50] sm:$0xff] }
  0x1d   :  { %482 = vmatprep.subr.bf16.mxu1 %v564_v1  ;;  %v492_v49 = vpack.c.bf16 %v237_v48, %v236_v47  ;;  %v239_v51 = vld [vmem:[%s755_s4 + $0x58] sm:$0xff]  ;;  %v240_v53 = vld [vmem:[%s755_s4 + $0x60] sm:$0xff]  ;;  %v241_v54 = vld [vmem:[%s755_s4 + $0x68] sm:$0xff] }
  0x1e   :  { %v495_v52 = vpack.c.bf16 %v239_v51, %v238_v50  ;;  %v498_v55 = vpack.c.bf16 %v241_v54, %v240_v53  ;;  %v242_v56 = vld [vmem:[%s755_s4 + $0x70] sm:$0xff]  ;;  %v243_v57 = vld [vmem:[%s755_s4 + $0x78] sm:$0xff]  ;;  %v343_v4 = vld [vmem:[%s756_s5] ss:$0 sm:$0xff]  ;;  %s328_s4 = sshll.u32 %s567_s22, 4  ;;  %s329_s4 = int_to_ptr.vmem [resolvable:$true] %s328_s4 }
  0x1f   :  { %463 = vmatpush3.bf16.msra.mxu0 %v462_v12  ;;  %v501_v58 = vpack.c.bf16 %v243_v57, %v242_v56  ;;  %v340_v59 = vld [vmem:[#allocation2] ss:$0 sm:$0xff]  ;;  %s536_s23 = scalar_lea.vmem %s329_s4, 128  ;;  %p541_p9 = scmp.lt.s32.totalorder %s329_s4, %s329_s4 }
  0x20   :  { %464 = vmatprep.subr.bf16.mxu0 %v564_v1  ;;  %484 = vmatpush3.bf16.msra.mxu1 %v483_v40  ;;  %p537_p8 = scmp.ne.s32.totalorder %s329_s4, %s536_s23  ;;  %p542_p10 = scmp.lt.s32.totalorder %s536_s23, %s536_s23 }
  0x21   :  { %485 = vmatprep.subr.bf16.mxu1 %v564_v1 }
  0x22   :  { %p543_p11 = por %p542_p10, %p541_p9 }
  0x23   :  { %466 = vmatpush3.bf16.msra.mxu0 %v465_v15 }
  0x24   :  { %467 = vmatprep.subr.bf16.mxu0 %v564_v1  ;;  %487 = vmatpush3.bf16.msra.mxu1 %v486_v43  ;;  %p544_p12 = pnand %p543_p11, %p537_p8 }
  0x25   :  { %488 = vmatprep.subr.bf16.mxu1 %v564_v1 }
  0x27   :  { %469 = vmatpush3.bf16.msra.mxu0 %v468_v18 }
  0x28   :  { %470 = vmatprep.subr.bf16.mxu0 %v564_v1  ;;  %490 = vmatpush3.bf16.msra.mxu1 %v489_v46 }
  0x29   :  { %491 = vmatprep.subr.bf16.mxu1 %v564_v1 }
  0x2b   :  { %472 = vmatpush3.bf16.msra.mxu0 %v471_v21 }
  0x2c   :  { %404 = vmatprep.subr.mxu0 %v566_v8  ;;  %493 = vmatpush3.bf16.msra.mxu1 %v492_v49 }
  0x2d   :  { %494 = vmatprep.subr.bf16.mxu1 %v564_v1 }
  0x2f   :  { %405 = vmatpush3.msk.msra.mxu0 %vm62_vm1, %v57_v22 }
  0x30   :  { %473 = vmatprep.subr.bf16.mxu0 %v564_v1  ;;  %496 = vmatpush3.bf16.msra.mxu1 %v495_v52 }
  0x31   :  { %497 = vmatprep.subr.bf16.mxu1 %v564_v1 }
  0x34   :  { %499 = vmatpush3.bf16.msra.mxu1 %v498_v55 }
  0x35   :  { %500 = vmatprep.subr.bf16.mxu1 %v564_v1 }
  0x38   :  { %502 = vmatpush3.bf16.msra.mxu1 %v501_v58 }
  0x94   :  { %v41_v27 = vpop.permute.xlu0 %40 }
  0x95   :  { %vm42_vm3 = vcmp.eq.s32.totalorder %v37_v24, %v41_v27 }
  0x96   :  { %v337_v31 = vsel %vm42_vm3, 1.0, %v566_v8 }
  0x97   :  { %407 = vmatmul.mubr.msk.f32.vlgmr.msra.gmra.mrb[0].mxu0 %vm58_vm2, %v337_v31 }
  0x98   :  { %475 = vmatpush3.bf16.msra.mxu0 %v474_v28  ;;  %417 = vmatprep.mubr.msk.f32.mxu0 %vm565_vm0, %v566_v8 }
  0x99   :  { %476 = vmatprep.subr.bf16.mxu0 %v564_v1 }
  0x9c   :  { %478 = vmatpush3.bf16.msra.mxu0 %v477_v32 }
 0x16a   :  { %v132_v33 = vpop.f32.mrb[0].mxu0 }
 0x16b   :  { %v408_v34 = vpop.f32.mrb[1].mxu0  ;;  %418 = vmatmul.mubr.msk.f32.vlgmr.msra.gmra.mrb[2].mxu0 %vm147_vm4, %v132_v33 }
 0x23e   :  { %v217_v60 = vpop.f32.mrb[2].mxu0 }
 0x23f   :  { %v218_v61 = vadd.f32 %v340_v59, %v217_v60  ;;  %v419_v62 = vpop.f32.mrb[3].mxu0 }
 0x241   :  { %v342_v63 = vmul.f32 -1.442695, %v218_v61 }
 0x243   :  { %510 = vpow2.f32 %v342_v63 }
 0x24d   :  { %v511_v0 = vpop.eup %510 }
 0x24e   :  { %v224_v2 = vadd.f32 1.0, %v511_v0 }
 0x250   :  { %512 = vrcp.f32 %v224_v2 }
 0x25a   :  { %v513_v1 = vpop.eup %512 }
 0x25b   :  { %v227_v3 = vmul.f32 %v513_v1, %v218_v61 }
 0x25d   :  { %453 = vmatmul.mubr.f32.vlgmr.msra.gmra.mrb[0].mxu1 %v227_v3 }
 0x330   :  { %v317_v5 = vpop.f32.mrb[0].mxu1 }
 0x331   :  { %v318_v6 = vadd.f32 %v343_v4, %v317_v5  ;;  %v454_v7 = vpop.f32.mrb[1].mxu1 }
 0x333   :  { %321 = vst [vmem:[#allocation5] sm:$0xff] %v318_v6 }
 0x334   :  { %547 = shalt.err (!%p544_p12)
}
 0x335   :  { %s548_s26 = scalar_lea.hbm %s757_s6, 128 }
 0x336   :  { %p549_p13 = scmp.ne.s32.totalorder %s757_s6, %s548_s26  ;;  %p552_p0 = scmp.lt.u32.totalorder %s548_s26, %s757_s6 }
 0x338   :  { %p554_p1 = pnand %p552_p0, %p549_p13 }
 0x33a   :  { %557 = shalt.err (!%p554_p1)
}
 0x33b   :  { %331 = dma.vmem_to_hbm [thread:$0]  %s329_s4, 128, %s757_s6, [#allocation4]  }
 0x33c   :  { %560 = dma.done.wait [#allocation4], 128  }
 0x33d   :  { %561 = vsyncadd [#allocation4], 4294967168 }
 0x33e   :  { %335 = vsyncpa [#allocation3], 1 }
 0x33f   :  { %336 = vsyncpa [#allocation4], 1 }

</bundles_post_ra>
